<compile_context>
chip_gen: v7x
topology: tpu7x:2x2x1
jax: 0.10.0
libtpu: 0.0.40
codegen_flags: <defaults>
</compile_context>

<pallas_src>
import jax
import jax.numpy as jnp
from jax.experimental import pallas as pl
from jax.experimental.pallas import tpu as pltpu


def _mse_var_kernel(mean_ref, var_ref, x_ref, o_ref):
    # Compute in f32 (exp/VPU have no bf16 path on v5e); cast back on store.
    v = var_ref[...].astype(jnp.float32)
    d = mean_ref[...].astype(jnp.float32) - x_ref[...].astype(jnp.float32)
    o_ref[...] = (0.5 * (jnp.exp(-v) * d * d + v)).astype(o_ref.dtype)


_TARGET_BLOCK_BYTES = 2 * 1024 * 1024  # ~2 MiB per array per block
_LANE = 128


def _choose_layout(n, itemsize):
    """Pick (rows, width, tile_rows, n_padded) for a lane-dense 2D slab."""
    # Widest lane-dense slab that divides n exactly (no padding), otherwise
    # fall back to the minimum 128-lane width with a small tail pad.
    width = _LANE
    for w in (4096, 2048, 1024, 512, 256, 128):
        if n % w == 0:
            width = w
            break
    rows_raw = -(-n // width)  # cdiv

    # Rows per block so each block is ~_TARGET_BLOCK_BYTES; multiple of 8.
    target_rows = max(8, (_TARGET_BLOCK_BYTES // (width * itemsize)) // 8 * 8)

    if rows_raw <= target_rows:
        # Whole problem fits in one block; block == full array dims (allowed
        # regardless of the (8,128) divisibility rule).
        tile_rows = rows_raw
        rows = rows_raw
    else:
        tile_rows = target_rows
        rows = -(-rows_raw // tile_rows) * tile_rows  # pad rows to tile mult
    return rows, width, tile_rows, rows * width


def mse_var(mean, var, inputs):
    assert mean.shape == var.shape == inputs.shape
    assert mean.dtype == var.dtype == inputs.dtype
    orig_shape = mean.shape
    dtype = mean.dtype
    n = mean.size
    itemsize = jnp.dtype(dtype).itemsize

    rows, width, tile_rows, n_pad = _choose_layout(n, itemsize)
    needs_pad = n_pad != n

    def to_slab(x):
        flat = x.reshape(-1)
        if needs_pad:
            flat = jnp.pad(flat, (0, n_pad - n))
        return flat.reshape(rows, width)

    m2, v2, x2 = to_slab(mean), to_slab(var), to_slab(inputs)

    grid = (rows // tile_rows,)
    spec = pl.BlockSpec((tile_rows, width), lambda i: (i, 0))

    cost = pl.CostEstimate(
        flops=5 * n,
        transcendentals=n,
        bytes_accessed=4 * n * itemsize,  # 3 inputs + 1 output
    )

    out2 = pl.pallas_call(
        _mse_var_kernel,
        out_shape=jax.ShapeDtypeStruct((rows, width), dtype),
        grid_spec=pltpu.PrefetchScalarGridSpec(
            num_scalar_prefetch=0,
            grid=grid,
            in_specs=[spec, spec, spec],
            out_specs=spec,
        ),
        compiler_params=pltpu.CompilerParams(
            dimension_semantics=("parallel",),
            # ~16 MiB double-buffered working set; leave explicit headroom.
            vmem_limit_bytes=64 << 20,
        ),
        cost_estimate=cost,
    )(m2, v2, x2)

    if needs_pad:
        return out2.reshape(-1)[:n].reshape(orig_shape)
    return out2.reshape(orig_shape)


def _reference(mean, var, inputs):
    return 0.5 * (jnp.exp(-var) * jnp.square(mean - inputs) + var)


if __name__ == "__main__":
    key = jax.random.PRNGKey(0)

    def run_check(k, shape):
        k1, k2, k3 = jax.random.split(k, 3)
        mean = jax.random.normal(k1, shape, dtype=jnp.float32)
        var = jax.random.normal(k2, shape, dtype=jnp.float32)
        inputs = jax.random.normal(k3, shape, dtype=jnp.float32)
        out = jax.block_until_ready(mse_var(mean, var, inputs))
        ref = _reference(mean, var, inputs)
        assert out.shape == shape
        assert jnp.allclose(out, ref, atol=1e-5, rtol=1e-5), f"mismatch at {shape}"

    k0, k1, k2 = jax.random.split(key, 3)
    # Primary small NCHW case from the module spec (no padding, single block).
    run_check(k0, (2, 4, 16, 16))
    # Exercises the ragged-tail path (n not a multiple of 128 -> small pad).
    run_check(k1, (3, 5, 17, 19))
    # Exercises the multi-block tiled path (512 x 4096 slab, 2 MiB blocks, grid=4).
    run_check(k2, (8, 16, 128, 128))

    print("KERNEL_OK")
</pallas_src>

<mosaic_0001>
module attributes {stable_mosaic.version = 11 : i64} {
  func.func @_mse_var_kernel(%arg0: i32, %arg1: memref<1x2048xf32, #tpu.memory_space<vmem>>, %arg2: memref<1x2048xf32, #tpu.memory_space<vmem>>, %arg3: memref<1x2048xf32, #tpu.memory_space<vmem>>, %arg4: memref<1x2048xf32, #tpu.memory_space<vmem>>) attributes {dimension_semantics = [#tpu.dimension_semantics<parallel>], iteration_bounds = array<i64: 1>, scalar_prefetch = 0 : i64, scratch_operands = 0 : i64, tpu.core_type = #tpu.core_type<tc>, window_params = [{transform_indices = @transform_0, window_bounds = array<i64: 1, 2048>}, {transform_indices = @transform_1, window_bounds = array<i64: 1, 2048>}, {transform_indices = @transform_2, window_bounds = array<i64: 1, 2048>}, {transform_indices = @transform_3, window_bounds = array<i64: 1, 2048>}]} {
    %c0 = arith.constant 0 : index
    %c0_0 = arith.constant 0 : index
    %0 = vector.load %arg2[%c0, %c0_0] : memref<1x2048xf32, #tpu.memory_space<vmem>>, vector<1x2048xf32>
    %c0_1 = arith.constant 0 : index
    %c0_2 = arith.constant 0 : index
    %1 = vector.load %arg1[%c0_1, %c0_2] : memref<1x2048xf32, #tpu.memory_space<vmem>>, vector<1x2048xf32>
    %c0_3 = arith.constant 0 : index
    %c0_4 = arith.constant 0 : index
    %2 = vector.load %arg3[%c0_3, %c0_4] : memref<1x2048xf32, #tpu.memory_space<vmem>>, vector<1x2048xf32>
    %3 = arith.subf %1, %2 : vector<1x2048xf32>
    %cst = arith.constant 0.000000e+00 : f32
    %4 = vector.broadcast %cst : f32 to vector<1x2048xf32>
    %5 = arith.subf %4, %0 : vector<1x2048xf32>
    %6 = math.exp %5 : vector<1x2048xf32>
    %7 = arith.mulf %6, %3 : vector<1x2048xf32>
    %8 = arith.mulf %7, %3 : vector<1x2048xf32>
    %9 = arith.addf %8, %0 : vector<1x2048xf32>
    %cst_5 = arith.constant 5.000000e-01 : f32
    %10 = vector.broadcast %cst_5 : f32 to vector<1x2048xf32>
    %11 = arith.mulf %10, %9 : vector<1x2048xf32>
    %c0_6 = arith.constant 0 : index
    %c0_7 = arith.constant 0 : index
    %12 = vector.load %arg4[%c0_6, %c0_7] : memref<1x2048xf32, #tpu.memory_space<vmem>>, vector<1x2048xf32>
    tpu.vector_store %arg4[%c0_6, %c0_7], %11 {strides = array<i32>} : memref<1x2048xf32, #tpu.memory_space<vmem>>, vector<1x2048xf32>,
    return
  }
  func.func @transform_0(%arg0: i32) -> (i32, i32) {
    %c0_i32 = arith.constant 0 : i32
    %c0_i32_0 = arith.constant 0 : i32
    return %arg0, %c0_i32 : i32, i32
  }
  func.func @transform_1(%arg0: i32) -> (i32, i32) {
    %c0_i32 = arith.constant 0 : i32
    %c0_i32_0 = arith.constant 0 : i32
    return %arg0, %c0_i32 : i32, i32
  }
  func.func @transform_2(%arg0: i32) -> (i32, i32) {
    %c0_i32 = arith.constant 0 : i32
    %c0_i32_0 = arith.constant 0 : i32
    return %arg0, %c0_i32 : i32, i32
  }
  func.func @transform_3(%arg0: i32) -> (i32, i32) {
    %c0_i32 = arith.constant 0 : i32
    %c0_i32_0 = arith.constant 0 : i32
    return %arg0, %c0_i32 : i32, i32
  }
}

</mosaic_0001>

<bundles_post_ra>
// kernel: tpu_custom_call.1
= control target key start
LH: loop header
LB: loop body
LE: loop exit
PB: predicated region body
PF: predicated region fallthrough
CT: control target
= control target key end

     0   :  { %8 = vsyncpa [#allocation3], 0  ;;  %s264_s0 = inlined_call_operand.hbm [shape: f32[1,2048], index: 0, kind: input, shape index: {}]   ;;  %s265_s1 = inlined_call_operand.hbm [shape: f32[1,2048], index: 1, kind: input, shape index: {}]   ;;  %s266_s2 = inlined_call_operand.hbm [shape: f32[1,2048], index: 2, kind: input, shape index: {}]   ;;  %s267_s3 = inlined_call_operand.hbm [shape: f32[1,2048], index: 3, kind: output, shape index: {}]  }
   0x1   :  { %9 = vsyncpa [#allocation6], 0 }
   0x2   :  { %10 = vsyncpa [#allocation4], 0  ;;  %s192_s12 = smov [#allocation5]   ;;  %s193_s14 = smov [#allocation2]  }
   0x3   :  { %s27_s13 = sshll.u32 %s192_s12, 4  ;;  %s17_s15 = sshll.u32 %s193_s14, 4  ;;  %s28_s13 = int_to_ptr.vmem [resolvable:$true] %s27_s13  ;;  %s18_s15 = int_to_ptr.vmem [resolvable:$true] %s17_s15 }
   0x4   :  { %s98_s18 = scalar_lea.hbm %s265_s1, 256 }
   0x5   :  { %p99_p0 = scmp.ne.s32.totalorder %s265_s1, %s98_s18  ;;  %p102_p1 = scmp.lt.u32.totalorder %s98_s18, %s265_s1 }
   0x7   :  { %p104_p2 = pnand %p102_p1, %p99_p0 }
   0x9   :  { %107 = shalt.err (!%p104_p2)
}
   0xa   :  { %s108_s23 = scalar_lea.vmem %s28_s13, 256  ;;  %p113_p4 = scmp.lt.s32.totalorder %s28_s13, %s28_s13 }
   0xb   :  { %p109_p3 = scmp.ne.s32.totalorder %s28_s13, %s108_s23  ;;  %p114_p5 = scmp.lt.s32.totalorder %s108_s23, %s108_s23 }
   0xd   :  { %p115_p6 = por %p114_p5, %p113_p4 }
   0xf   :  { %p116_p7 = pnand %p115_p6, %p109_p3 }
  0x11   :  { %119 = shalt.err (!%p116_p7)
}
  0x12   :  { %30 = dma.hbm_to_vmem [thread:$0]  %s265_s1, 256, %s28_s13, [#allocation6]  }
  0x13   :  { %s120_s28 = scalar_lea.hbm %s264_s0, 256 }
  0x14   :  { %p121_p8 = scmp.ne.s32.totalorder %s264_s0, %s120_s28  ;;  %p124_p9 = scmp.lt.u32.totalorder %s120_s28, %s264_s0 }
  0x16   :  { %p126_p10 = pnand %p124_p9, %p121_p8 }
  0x18   :  { %129 = shalt.err (!%p126_p10)
}
  0x19   :  { %s130_s6 = scalar_lea.vmem %s18_s15, 256  ;;  %p135_p12 = scmp.lt.s32.totalorder %s18_s15, %s18_s15 }
  0x1a   :  { %p131_p11 = scmp.ne.s32.totalorder %s18_s15, %s130_s6  ;;  %p136_p13 = scmp.lt.s32.totalorder %s130_s6, %s130_s6 }
  0x1c   :  { %p137_p0 = por %p136_p13, %p135_p12 }
  0x1e   :  { %p138_p1 = pnand %p137_p0, %p131_p11 }
  0x20   :  { %141 = shalt.err (!%p138_p1)
}
  0x21   :  { %20 = dma.hbm_to_vmem [thread:$0]  %s264_s0, 256, %s18_s15, [#allocation3]  }
  0x22   :  { %s194_s8 = smov [#allocation7]   ;;  %s142_s12 = scalar_lea.hbm %s266_s2, 256 }
  0x23   :  { %s37_s9 = sshll.u32 %s194_s8, 4  ;;  %p143_p2 = scmp.ne.s32.totalorder %s266_s2, %s142_s12  ;;  %s38_s9 = int_to_ptr.vmem [resolvable:$true] %s37_s9 }
  0x24   :  { %p146_p3 = scmp.lt.u32.totalorder %s142_s12, %s266_s2 }
  0x26   :  { %p148_p4 = pnand %p146_p3, %p143_p2 }
  0x28   :  { %151 = shalt.err (!%p148_p4)
}
  0x29   :  { %s152_s18 = scalar_lea.vmem %s38_s9, 256  ;;  %p157_p6 = scmp.lt.s32.totalorder %s38_s9, %s38_s9 }
  0x2a   :  { %p153_p5 = scmp.ne.s32.totalorder %s38_s9, %s152_s18  ;;  %p158_p7 = scmp.lt.s32.totalorder %s152_s18, %s152_s18 }
  0x2c   :  { %p159_p8 = por %p158_p7, %p157_p6 }
  0x2e   :  { %p160_p9 = pnand %p159_p8, %p153_p5 }
  0x30   :  { %163 = shalt.err (!%p160_p9)
}
  0x31   :  { %40 = dma.hbm_to_vmem [thread:$0]  %s266_s2, 256, %s38_s9, [#allocation6]  }
  0x32   :  { %186 = dma.done.wait [#allocation3], 256  }
  0x33   :  { %187 = vsyncadd [#allocation3], 4294967040 }
  0x34   :  { %188 = dma.done.wait [#allocation6], 512  }
  0x35   :  { %189 = vsyncadd [#allocation6], 4294966784  ;;  %v50_v0 = vld [vmem:[#allocation5] sm:$0xff]  ;;  %v51_v2 = vld [vmem:[#allocation5 + $0x8] sm:$0xff]  ;;  %s195_s2 = smov [#allocation8]  }
  0x36   :  { %v58_v1 = vsub.f32 0.0, %v50_v0  ;;  %v59_v3 = vsub.f32 0.0, %v51_v2  ;;  %v52_v6 = vld [vmem:[#allocation2] sm:$0xff]  ;;  %v53_v8 = vld [vmem:[#allocation2 + $0x8] sm:$0xff]  ;;  %s80_s19 = sshll.u32 %s195_s2, 4  ;;  %s81_s19 = int_to_ptr.vmem [resolvable:$true] %s80_s19 }
  0x37   :  { %v54_v7 = vld [vmem:[#allocation7] sm:$0xff]  ;;  %v55_v9 = vld [vmem:[#allocation7 + $0x8] sm:$0xff]  ;;  %s164_s20 = scalar_lea.vmem %s81_s19, 256  ;;  %p169_p11 = scmp.lt.s32.totalorder %s81_s19, %s81_s19 }
  0x38   :  { %v60_v4 = vmul.f32 1.442695, %v58_v1  ;;  %v62_v5 = vmul.f32 1.442695, %v59_v3  ;;  %v56_v10 = vsub.f32 %v52_v6, %v54_v7  ;;  %v57_v11 = vsub.f32 %v53_v8, %v55_v9  ;;  %p165_p10 = scmp.ne.s32.totalorder %s81_s19, %s164_s20  ;;  %p170_p12 = scmp.lt.s32.totalorder %s164_s20, %s164_s20 }
  0x3a   :  { %94 = vpow2.f32 %v60_v4  ;;  %p171_p13 = por %p170_p12, %p169_p11 }
  0x3b   :  { %96 = vpow2.f32 %v62_v5 }
  0x3c   :  { %p172_p0 = pnand %p171_p13, %p165_p10 }
  0x44   :  { %v95_v12 = vpop.eup %94 }
  0x45   :  { %v97_v13 = vpop.eup %96  ;;  %v64_v14 = vmul.f32 %v95_v12, %v56_v10 }
  0x46   :  { %v65_v15 = vmul.f32 %v97_v13, %v57_v11 }
  0x47   :  { %v66_v16 = vmul.f32 %v64_v14, %v56_v10 }
  0x48   :  { %v67_v17 = vmul.f32 %v65_v15, %v57_v11 }
  0x49   :  { %v68_v18 = vadd.f32 %v66_v16, %v50_v0 }
  0x4a   :  { %v69_v19 = vadd.f32 %v67_v17, %v51_v2 }
  0x4b   :  { %v70_v20 = vmul.f32 0.5, %v68_v18 }
  0x4c   :  { %v71_v21 = vmul.f32 0.5, %v69_v19 }
  0x4d   :  { %72 = vst [vmem:[#allocation8] sm:$0xff] %v70_v20 }
  0x4e   :  { %73 = vst [vmem:[#allocation8 + $0x8] sm:$0xff] %v71_v21 }
  0x4f   :  { %175 = shalt.err (!%p172_p0)
}
  0x50   :  { %s176_s23 = scalar_lea.hbm %s267_s3, 256 }
  0x51   :  { %p177_p1 = scmp.ne.s32.totalorder %s267_s3, %s176_s23  ;;  %p180_p2 = scmp.lt.u32.totalorder %s176_s23, %s267_s3 }
  0x53   :  { %p182_p3 = pnand %p180_p2, %p177_p1 }
  0x55   :  { %185 = shalt.err (!%p182_p3)
}
  0x56   :  { %83 = dma.vmem_to_hbm [thread:$0]  %s81_s19, 256, %s267_s3, [#allocation4]  }
  0x57   :  { %190 = dma.done.wait [#allocation4], 256  }
  0x58   :  { %191 = vsyncadd [#allocation4], 4294967040 }
  0x59   :  { %87 = vsyncpa [#allocation3], 1 }
  0x5a   :  { %88 = vsyncpa [#allocation6], 1 }
  0x5b   :  { %89 = vsyncpa [#allocation4], 1 }

</bundles_post_ra>
